<compile_context>
chip_gen: v6e
topology: v6e:2x2x1
jax: 0.10.0
libtpu: 0.0.40
codegen_flags: <defaults>
</compile_context>

<pallas_src>
import jax
import jax.numpy as jnp
import numpy as np
from jax.experimental import pallas as pl
from jax.experimental.pallas import tpu as pltpu

SCALE = 100.0


def _ect_points_kernel(x_ref, w_ref, vb_ref, oh_ref, linb_ref, out_ref, acc_ref):
    """One node tile of the fused ECT-points computation.

    x_ref    (TN, D)    node coordinates (current node tile)
    w_ref    (TN, 1)    node weights
    vb_ref   (D, S*T)   directions tiled S times along lanes (col s*T+t -> v[:, t])
    oh_ref   (B, TN)    graph-membership one-hot (current node tile)
    linb_ref (1, S*T)   bump thresholds repeated T times (col s*T+t -> lin[s])
    out_ref  (B, S*T)   lane-dense output block (same block for every grid step)
    acc_ref  (B, S*T)   f32 VMEM accumulator scratch
    """
    @pl.when(pl.program_id(0) == 0)
    def _():
        acc_ref[...] = jnp.zeros_like(acc_ref)

    xw = x_ref[...] * w_ref[...]                        # (TN, D)   VPU
    vb = vb_ref[...]                                    # (D, S*T)

    # D is tiny (e.g. 3): project on the VPU against the lane-packed directions,
    # producing nh already broadcast to the fused (TN, S*T) layout.
    nh = xw[:, 0:1] * vb[0:1, :]                        # (TN, S*T)
    for d in range(1, xw.shape[1]):                     # static, tiny unroll
        nh = nh + xw[:, d:d + 1] * vb[d:d + 1, :]

    ecc = jax.nn.sigmoid(SCALE * (linb_ref[...] - nh))  # (TN, S*T)  EUP

    # Segment-add over nodes expressed as a single lane-dense matmul with the one-hot.
    acc_ref[...] += jnp.dot(oh_ref[...], ecc,
                            preferred_element_type=jnp.float32)  # (B, S*T)  MXU

    @pl.when(pl.program_id(0) == pl.num_programs(0) - 1)
    def _():
        out_ref[...] = acc_ref[...]


def ect_layer_points(x, node_weights, batch_idx, v, lin, num_graphs, *, node_tile=512):
    """Pallas implementation of ECTLayer.forward (ect_type='points', normalized=False)."""
    N, D = x.shape
    T = v.shape[-1]
    S = lin.shape[0]
    ST = S * T

    x = x.astype(jnp.float32)
    w_col = node_weights.reshape(N, 1).astype(jnp.float32)                 # (N, 1)
    onehot = (batch_idx[None, :] ==
              jnp.arange(num_graphs, dtype=batch_idx.dtype)[:, None]
              ).astype(jnp.float32)                                        # (B, N)

    # Lane-packed broadcast operands (tiny; built once in the wrapper).
    v_bcast = jnp.tile(v.astype(jnp.float32), (1, S))                      # (D, S*T)
    lin_bcast = jnp.repeat(lin.astype(jnp.float32), T).reshape(1, ST)      # (1, S*T)

    # Node tiling: a single full block for small N; otherwise 128-aligned tiles.
    # Zero-padded nodes have zero one-hot columns, so they contribute nothing.
    if N <= node_tile:
        tn = N
        n_pad = N
    else:
        tn = node_tile                                  # multiple of 128 (MXU-K aligned)
        n_pad = pl.cdiv(N, tn) * tn
        pad = n_pad - N
        x = jnp.pad(x, ((0, pad), (0, 0)))
        w_col = jnp.pad(w_col, ((0, pad), (0, 0)))
        onehot = jnp.pad(onehot, ((0, 0), (0, pad)))
    grid = (n_pad // tn,)

    out_flat = pl.pallas_call(
        _ect_points_kernel,
        out_shape=jax.ShapeDtypeStruct((num_graphs, ST), jnp.float32),
        grid_spec=pltpu.PrefetchScalarGridSpec(
            num_scalar_prefetch=0,
            grid=grid,
            in_specs=[
                pl.BlockSpec((tn, D), lambda i: (i, 0)),            # x tile
                pl.BlockSpec((tn, 1), lambda i: (i, 0)),            # w tile
                pl.BlockSpec((D, ST), lambda i: (0, 0)),            # v_bcast (resident)
                pl.BlockSpec((num_graphs, tn), lambda i: (0, i)),   # onehot tile
                pl.BlockSpec((1, ST), lambda i: (0, 0)),            # lin_bcast (resident)
            ],
            out_specs=pl.BlockSpec((num_graphs, ST), lambda i: (0, 0)),
            scratch_shapes=[pltpu.VMEM((num_graphs, ST), jnp.float32)],
        ),
        compiler_params=pltpu.CompilerParams(
            dimension_semantics=("arbitrary",),   # node axis is a reduction
        ),
    )(x, w_col, v_bcast, onehot, lin_bcast)

    # (B, S*T) -> (B, S, T): free reshape (no transpose / extra HBM pass).
    return out_flat.reshape(num_graphs, S, T)


def ect_layer_points_ref(x, node_weights, batch_idx, v, lin, num_graphs):
    """Pure-JAX reference mirroring the PyTorch code path exactly."""
    nh = (x * node_weights[:, None]) @ v                                   # (N, T)
    ecc = jax.nn.sigmoid(SCALE * (lin[:, None, None] - nh[None, :, :]))    # (S, N, T)
    ecc_nst = jnp.moveaxis(ecc, 1, 0)                                      # (N, S, T)
    out = jnp.zeros((num_graphs, lin.shape[0], v.shape[-1]), jnp.float32)
    out = out.at[batch_idx].add(ecc_nst)                                   # segment_add_coo
    return out                                                             # (B, S, T)


if __name__ == "__main__":
    # ECTConfig defaults: bump_steps=32, radius=1.1, ect_type='points',
    # normalized=False, fixed=True.
    bump_steps = 32
    radius = 1.1
    lin = jnp.linspace(-radius, radius, bump_steps, dtype=jnp.float32)
    base_key = jax.random.PRNGKey(0)

    def run_case(case_id, num_nodes, num_graphs, num_dims, num_thetas):
        key = jax.random.fold_in(base_key, case_id)
        kx, kw, kv = jax.random.split(key, 3)
        x = jax.random.normal(kx, (num_nodes, num_dims), dtype=jnp.float32)
        node_weights = jax.random.uniform(kw, (num_nodes,), dtype=jnp.float32,
                                          minval=0.5, maxval=1.5)
        batch_idx = jnp.repeat(jnp.arange(num_graphs, dtype=jnp.int32),
                               num_nodes // num_graphs)
        v_raw = jax.random.normal(kv, (num_dims, num_thetas), dtype=jnp.float32)
        v = v_raw / jnp.linalg.norm(v_raw, axis=0, keepdims=True)

        out = ect_layer_points(x, node_weights, batch_idx, v, lin, num_graphs)
        out = jax.block_until_ready(out)
        ref = ect_layer_points_ref(x, node_weights, batch_idx, v, lin, num_graphs)
        np.testing.assert_allclose(np.asarray(out), np.asarray(ref),
                                   rtol=2e-4, atol=5e-4)

    # Small case matching the module defaults (single node block, grid=(1,)).
    run_case(case_id=0, num_nodes=32, num_graphs=2, num_dims=3, num_thetas=16)
    # Larger case exercising the tiled node grid + accumulator (700 -> pad 1024, grid=(2,)).
    run_case(case_id=1, num_nodes=700, num_graphs=4, num_dims=3, num_thetas=16)

    # TODO(synk): 'edges'/'faces' ECT variants need a gather + segment-max over
    # edge/face index lists (data-dependent gather), and normalized=True needs a
    # per-(b, channel) amax pass; only the default 'points', normalized=False path
    # is implemented here.
    print("KERNEL_OK")
</pallas_src>

<mosaic_0001>
module attributes {stable_mosaic.version = 11 : i64} {
  func.func @_ect_points_kernel(%arg0: i32, %arg1: memref<32x3xf32, #tpu.memory_space<vmem>>, %arg2: memref<32x1xf32, #tpu.memory_space<vmem>>, %arg3: memref<3x512xf32, #tpu.memory_space<vmem>>, %arg4: memref<2x32xf32, #tpu.memory_space<vmem>>, %arg5: memref<1x512xf32, #tpu.memory_space<vmem>>, %arg6: memref<2x512xf32, #tpu.memory_space<vmem>>, %arg7: memref<2x512xf32, #tpu.memory_space<vmem>>) attributes {dimension_semantics = [#tpu.dimension_semantics<arbitrary>], iteration_bounds = array<i64: 1>, scalar_prefetch = 0 : i64, scratch_operands = 1 : i64, tpu.core_type = #tpu.core_type<tc>, window_params = [{transform_indices = @transform_0, window_bounds = array<i64: 32, 3>}, {transform_indices = @transform_1, window_bounds = array<i64: 32, 1>}, {pipeline_mode = #tpu.pipeline_mode<synchronous>, transform_indices = @transform_2, window_bounds = array<i64: 3, 512>}, {transform_indices = @transform_3, window_bounds = array<i64: 2, 32>}, {pipeline_mode = #tpu.pipeline_mode<synchronous>, transform_indices = @transform_4, window_bounds = array<i64: 1, 512>}, {pipeline_mode = #tpu.pipeline_mode<synchronous>, transform_indices = @transform_5, window_bounds = array<i64: 2, 512>}]} {
    %c0_i32 = arith.constant 0 : i32
    %0 = arith.cmpi eq, %arg0, %c0_i32 : i32
    %1 = arith.extui %0 : i1 to i32
    %c0_i32_0 = arith.constant 0 : i32
    %2 = arith.cmpi ne, %1, %c0_i32_0 : i32
    scf.if %2 {
      %cst_18 = arith.constant 0.000000e+00 : f32
      %43 = vector.broadcast %cst_18 : f32 to vector<2x512xf32>
      %c0_19 = arith.constant 0 : index
      %c0_20 = arith.constant 0 : index
      %44 = vector.load %arg7[%c0_19, %c0_20] : memref<2x512xf32, #tpu.memory_space<vmem>>, vector<2x512xf32>
      tpu.vector_store %arg7[%c0_19, %c0_20], %43 {strides = array<i32>} : memref<2x512xf32, #tpu.memory_space<vmem>>, vector<2x512xf32>,
    } else {
    }
    %c0 = arith.constant 0 : index
    %c0_1 = arith.constant 0 : index
    %3 = vector.load %arg1[%c0, %c0_1] : memref<32x3xf32, #tpu.memory_space<vmem>>, vector<32x3xf32>
    %c0_2 = arith.constant 0 : index
    %c0_3 = arith.constant 0 : index
    %4 = vector.load %arg2[%c0_2, %c0_3] : memref<32x1xf32, #tpu.memory_space<vmem>>, vector<32x1xf32>
    %5 = vector.broadcast %4 : vector<32x1xf32> to vector<32x3xf32>
    %6 = arith.mulf %3, %5 : vector<32x3xf32>
    %c0_4 = arith.constant 0 : index
    %c0_5 = arith.constant 0 : index
    %7 = vector.load %arg3[%c0_4, %c0_5] : memref<3x512xf32, #tpu.memory_space<vmem>>, vector<3x512xf32>
    %8 = vector.extract_strided_slice %6 {offsets = [0, 0], sizes = [32, 1], strides = [1, 1]} : vector<32x3xf32> to vector<32x1xf32>
    %9 = vector.extract_strided_slice %7 {offsets = [0, 0], sizes = [1, 512], strides = [1, 1]} : vector<3x512xf32> to vector<1x512xf32>
    %10 = vector.broadcast %8 : vector<32x1xf32> to vector<32x512xf32>
    %11 = vector.broadcast %9 : vector<1x512xf32> to vector<32x512xf32>
    %12 = arith.mulf %10, %11 : vector<32x512xf32>
    %13 = vector.extract_strided_slice %6 {offsets = [0, 1], sizes = [32, 1], strides = [1, 1]} : vector<32x3xf32> to vector<32x1xf32>
    %14 = vector.extract_strided_slice %7 {offsets = [1, 0], sizes = [1, 512], strides = [1, 1]} : vector<3x512xf32> to vector<1x512xf32>
    %15 = vector.broadcast %13 : vector<32x1xf32> to vector<32x512xf32>
    %16 = vector.broadcast %14 : vector<1x512xf32> to vector<32x512xf32>
    %17 = arith.mulf %15, %16 : vector<32x512xf32>
    %18 = arith.addf %12, %17 : vector<32x512xf32>
    %19 = vector.extract_strided_slice %6 {offsets = [0, 2], sizes = [32, 1], strides = [1, 1]} : vector<32x3xf32> to vector<32x1xf32>
    %20 = vector.extract_strided_slice %7 {offsets = [2, 0], sizes = [1, 512], strides = [1, 1]} : vector<3x512xf32> to vector<1x512xf32>
    %21 = vector.broadcast %19 : vector<32x1xf32> to vector<32x512xf32>
    %22 = vector.broadcast %20 : vector<1x512xf32> to vector<32x512xf32>
    %23 = arith.mulf %21, %22 : vector<32x512xf32>
    %24 = arith.addf %18, %23 : vector<32x512xf32>
    %c0_6 = arith.constant 0 : index
    %c0_7 = arith.constant 0 : index
    %25 = vector.load %arg5[%c0_6, %c0_7] : memref<1x512xf32, #tpu.memory_space<vmem>>, vector<1x512xf32>
    %26 = vector.broadcast %25 : vector<1x512xf32> to vector<32x512xf32>
    %27 = arith.subf %26, %24 : vector<32x512xf32>
    %cst = arith.constant 1.000000e+02 : f32
    %28 = vector.broadcast %cst : f32 to vector<32x512xf32>
    %29 = arith.mulf %28, %27 : vector<32x512xf32>
    %30 = arith.negf %29 : vector<32x512xf32>
    %31 = math.exp %30 : vector<32x512xf32>
    %cst_8 = arith.constant 1.000000e+00 : f32
    %32 = vector.broadcast %cst_8 : f32 to vector<32x512xf32>
    %33 = arith.addf %32, %31 : vector<32x512xf32>
    %34 = arith.divf %32, %33 : vector<32x512xf32>
    %c0_9 = arith.constant 0 : index
    %c0_10 = arith.constant 0 : index
    %35 = vector.load %arg7[%c0_9, %c0_10] : memref<2x512xf32, #tpu.memory_space<vmem>>, vector<2x512xf32>
    %c0_11 = arith.constant 0 : index
    %c0_12 = arith.constant 0 : index
    %36 = vector.load %arg4[%c0_11, %c0_12] : memref<2x32xf32, #tpu.memory_space<vmem>>, vector<2x32xf32>
    %cst_13 = arith.constant dense<0.000000e+00> : vector<2x512xf32>
    %37 = tpu.matmul %36, %34, %cst_13 {dimension_numbers = #tpu.dot_dimension_numbers<[1], [0], [0], [1], [0, 0, 1, 1], [], []>} : vector<2x32xf32>, vector<32x512xf32>, vector<2x512xf32> -> vector<2x512xf32>
    %38 = arith.addf %35, %37 : vector<2x512xf32>
    %c0_14 = arith.constant 0 : index
    %c0_15 = arith.constant 0 : index
    %39 = vector.load %arg7[%c0_14, %c0_15] : memref<2x512xf32, #tpu.memory_space<vmem>>, vector<2x512xf32>
    tpu.vector_store %arg7[%c0_14, %c0_15], %38 {strides = array<i32>} : memref<2x512xf32, #tpu.memory_space<vmem>>, vector<2x512xf32>,
    %c0_i32_16 = arith.constant 0 : i32
    %40 = arith.cmpi eq, %arg0, %c0_i32_16 : i32
    %41 = arith.extui %40 : i1 to i32
    %c0_i32_17 = arith.constant 0 : i32
    %42 = arith.cmpi ne, %41, %c0_i32_17 : i32
    scf.if %42 {
      %c0_18 = arith.constant 0 : index
      %c0_19 = arith.constant 0 : index
      %43 = vector.load %arg7[%c0_18, %c0_19] : memref<2x512xf32, #tpu.memory_space<vmem>>, vector<2x512xf32>
      %c0_20 = arith.constant 0 : index
      %c0_21 = arith.constant 0 : index
      %44 = vector.load %arg6[%c0_20, %c0_21] : memref<2x512xf32, #tpu.memory_space<vmem>>, vector<2x512xf32>
      tpu.vector_store %arg6[%c0_20, %c0_21], %43 {strides = array<i32>} : memref<2x512xf32, #tpu.memory_space<vmem>>, vector<2x512xf32>,
    } else {
    }
    return
  }
  func.func @transform_0(%arg0: i32) -> (i32, i32) {
    %c0_i32 = arith.constant 0 : i32
    %c0_i32_0 = arith.constant 0 : i32
    return %arg0, %c0_i32 : i32, i32
  }
  func.func @transform_1(%arg0: i32) -> (i32, i32) {
    %c0_i32 = arith.constant 0 : i32
    %c0_i32_0 = arith.constant 0 : i32
    return %arg0, %c0_i32 : i32, i32
  }
  func.func @transform_2(%arg0: i32) -> (i32, i32) {
    %c0_i32 = arith.constant 0 : i32
    %c0_i32_0 = arith.constant 0 : i32
    %c0_i32_1 = arith.constant 0 : i32
    return %c0_i32, %c0_i32_0 : i32, i32
  }
  func.func @transform_3(%arg0: i32) -> (i32, i32) {
    %c0_i32 = arith.constant 0 : i32
    %c0_i32_0 = arith.constant 0 : i32
    return %c0_i32, %arg0 : i32, i32
  }
  func.func @transform_4(%arg0: i32) -> (i32, i32) {
    %c0_i32 = arith.constant 0 : i32
    %c0_i32_0 = arith.constant 0 : i32
    %c0_i32_1 = arith.constant 0 : i32
    return %c0_i32, %c0_i32_0 : i32, i32
  }
  func.func @transform_5(%arg0: i32) -> (i32, i32) {
    %c0_i32 = arith.constant 0 : i32
    %c0_i32_0 = arith.constant 0 : i32
    %c0_i32_1 = arith.constant 0 : i32
    return %c0_i32, %c0_i32_0 : i32, i32
  }
}

</mosaic_0001>

<bundles_post_ra>
// kernel: tpu_custom_call.1
= control target key start
LH: loop header
LB: loop body
LE: loop exit
PB: predicated region body
PF: predicated region fallthrough
CT: control target
= control target key end

     0   :  { %v763_v2 = vmov 0   ;;  %s950_s0 = inlined_call_operand.vmem [shape: f32[32,3], index: 0, kind: input, shape index: {}]   ;;  %s951_s1 = inlined_call_operand.vmem [shape: f32[32,1], index: 1, kind: input, shape index: {}]   ;;  %s952_s2 = inlined_call_operand.vmem [shape: f32[3,512], index: 2, kind: input, shape index: {}]   ;;  %s953_s3 = inlined_call_operand.vmem [shape: f32[2,32], index: 3, kind: input, shape index: {}]   ;;  %s954_s4 = inlined_call_operand.vmem [shape: f32[1,512], index: 4, kind: input, shape index: {}]   ;;  %s955_s5 = inlined_call_operand.hbm [shape: f32[2,512], index: 5, kind: output, shape index: {}]  }
   0x1   :  { %v33_v0 = vld [vmem:[%s951_s1 + $0x18] sm:$0xff]  ;;  %v31_v1 = vld [vmem:[%s951_s1 + $0x8] sm:$0xff]  ;;  %667 = vset.pattern.permute.xlu0 %v763_v2  ;;  %668 = vset.pattern.permute.xlu1 %v763_v2 }
   0x2   :  { %51 = vperm.xlu0 %667, %v33_v0   ;;  %41 = vperm.xlu1 %668, %v31_v1  }
   0x3   :  { %10 = vsyncpa [#allocation4], 0  ;;  %v32_v3 = vld [vmem:[%s951_s1 + $0x10] sm:$0xff]  ;;  %v30_v4 = vld [vmem:[%s951_s1] sm:$0xff]  ;;  %v764_v5 = vmov 1   ;;  %v765_v15 = vmov 2   ;;  %v82_v20 = vlaneseq }
   0x4   :  { %v29_v6 = vld [vmem:[%s950_s0 + $0x18] sm:$0xff]  ;;  %v28_v9 = vld [vmem:[%s950_s0 + $0x10] sm:$0xff]  ;;  %v27_v12 = vld [vmem:[%s950_s0 + $0x8] sm:$0xff]  ;;  %v766_v19 = vmov 0.0   ;;  %vm454_vm0 = vcmask 261120  }
   0x5   :  { %v26_v17 = vld [vmem:[%s950_s0] sm:$0xff]  ;;  %522 = vmatprep.mubr.f32.mxu0 %v766_v19  ;;  %593 = vmatprep.mubr.f32.mxu1 %v766_v19  ;;  %v823_v21 = vshrl.u32 %v82_v20, 7  ;;  %v59_v25 = vld [vmem:[%s952_s2 + $0x8] sm:$0x77] }
   0x6   :  { %46 = vperm.xlu0 %667, %v32_v3   ;;  %36 = vperm.xlu1 %668, %v30_v4   ;;  %v58_v24 = vld [vmem:[%s952_s2] sm:$0x77] }
   0x7   :  { %v152_v22 = vsub.s32 1, %v823_v21  ;;  %v84_v23 = vsub.s32 0, %v823_v21  ;;  %v156_v26 = vsub.s32 5, %v823_v21  ;;  %v88_v27 = vsub.s32 4, %v823_v21  ;;  %v302_v53 = vld [vmem:[%s954_s4] sm:$0xf] }
   0x8   :  { %v236_v32 = vsub.s32 2, %v823_v21  ;;  %v240_v33 = vsub.s32 6, %v823_v21  ;;  %v318_v63 = vsub.s32 3, %v823_v21 }
   0x9   :  { %v153_v28 = vrot.slane %v58_v24, %v152_v22  ;;  %v161_v29 = vrot.slane %v59_v25, %v152_v22  ;;  %v85_v30 = vrot.slane %v58_v24, %v84_v23  ;;  %v93_v31 = vrot.slane %v59_v25, %v84_v23 }
   0xa   :  { %669 = vset.pattern.permute.xlu1 %v764_v5  ;;  %v157_v34 = vrot.slane %v58_v24, %v156_v26  ;;  %v165_v35 = vrot.slane %v59_v25, %v156_v26  ;;  %v89_v37 = vrot.slane %v58_v24, %v88_v27  ;;  %v97_v38 = vrot.slane %v59_v25, %v88_v27 }
   0xb   :  { %v837_v40 = vrot.slane %v153_v28, %v152_v22  ;;  %v839_v41 = vrot.slane %v161_v29, %v152_v22  ;;  %v841_v42 = vrot.slane %v85_v30, %v84_v23  ;;  %v843_v43 = vrot.slane %v93_v31, %v84_v23 }
   0xc   :  { %v237_v44 = vrot.slane %v58_v24, %v236_v32  ;;  %v245_v45 = vrot.slane %v59_v25, %v236_v32  ;;  %v241_v46 = vrot.slane %v58_v24, %v240_v33  ;;  %v845_v47 = vrot.slane %v157_v34, %v152_v22 }
   0xd   :  { %v847_v48 = vrot.slane %v165_v35, %v152_v22  ;;  %v849_v49 = vrot.slane %v89_v37, %v84_v23  ;;  %v851_v50 = vrot.slane %v97_v38, %v84_v23  ;;  %v249_v60 = vrot.slane %v59_v25, %v240_v33 }
   0xe   :  { %v860_v58 = vrot.slane %v237_v44, %v236_v32  ;;  %v862_v59 = vrot.slane %v245_v45, %v236_v32  ;;  %v864_v61 = vrot.slane %v241_v46, %v236_v32  ;;  %v866_v62 = vrot.slane %v302_v53, %v84_v23 }
   0xf   :  { %v885_v19 = vrot.slane %v302_v53, %v236_v32  ;;  %v887_v20 = vrot.slane %v302_v53, %v152_v22  ;;  %v889_v23 = vrot.slane %v302_v53, %v318_v63 }
  0x7d   :  { %v52_v7 = vpop.permute.xlu0 %51  ;;  %v42_v13 = vpop.permute.xlu1 %41 }
  0x7e   :  { %v57_v8 = vmul.f32 %v52_v7, %v29_v6  ;;  %v55_v14 = vmul.f32 %v42_v13, %v27_v12 }
  0x80   :  { %147 = vperm.xlu1 %669, %v57_v8   ;;  %77 = vperm.xlu0 %667, %v57_v8  }
  0x81   :  { %v47_v10 = vpop.permute.xlu0 %46  ;;  %v37_v16 = vpop.permute.xlu1 %36 }
  0x82   :  { %v56_v11 = vmul.f32 %v47_v10, %v28_v9  ;;  %v54_v18 = vmul.f32 %v37_v16, %v26_v17 }
  0x84   :  { %143 = vperm.xlu1 %669, %v56_v11   ;;  %72 = vperm.xlu0 %667, %v56_v11  }
  0x88   :  { %671 = vset.pattern.permute.xlu1 %v763_v2  ;;  %670 = vset.pattern.permute.xlu0 %v765_v15 }
  0x89   :  { %231 = vperm.xlu0 %670, %v57_v8   ;;  %67 = vperm.xlu1 %671, %v55_v14  }
  0x8d   :  { %227 = vperm.xlu0 %670, %v56_v11   ;;  %672 = vset.pattern.permute.xlu1 %v764_v5 }
  0x8e   :  { %139 = vperm.xlu1 %672, %v55_v14  }
  0x91   :  { %674 = vset.pattern.permute.xlu0 %v764_v5 }
  0x92   :  { %673 = vset.pattern.permute.xlu1 %v763_v2  ;;  %135 = vperm.xlu0 %674, %v54_v18  }
  0x93   :  { %62 = vperm.xlu1 %673, %v54_v18  }
  0x96   :  { %676 = vset.pattern.permute.xlu0 %v765_v15 }
  0x97   :  { %675 = vset.pattern.permute.xlu1 %v765_v15 }
  0x98   :  { %223 = vperm.xlu1 %675, %v55_v14  }
  0x9c   :  { %219 = vperm.xlu1 %675, %v54_v18   ;;  %v883_v18 = vrot.slane %v249_v60, %v236_v32 }
  0xfb   :  { %v148_v36 = vpop.permute.xlu1 %147  ;;  %v78_v39 = vpop.permute.xlu0 %77 }
  0xfc   :  { %v198_v54 = vmul.f32 %v837_v40, %v148_v36  ;;  %v200_v55 = vmul.f32 %v839_v41, %v148_v36  ;;  %v130_v56 = vmul.f32 %v841_v42, %v78_v39  ;;  %v132_v57 = vmul.f32 %v843_v43, %v78_v39 }
  0xfd   :  { %v199_v0 = vmul.f32 %v845_v47, %v148_v36  ;;  %v201_v1 = vmul.f32 %v847_v48, %v148_v36  ;;  %v131_v2 = vmul.f32 %v849_v49, %v78_v39  ;;  %v133_v3 = vmul.f32 %v851_v50, %v78_v39 }
  0xfe   :  { %v214_v4 = vadd.f32 %v198_v54, %v130_v56  ;;  %v216_v5 = vadd.f32 %v200_v55, %v132_v57 }
  0xff   :  { %v144_v51 = vpop.permute.xlu1 %143  ;;  %v73_v52 = vpop.permute.xlu0 %72  ;;  %v215_v24 = vadd.f32 %v199_v0, %v131_v2  ;;  %v217_v25 = vadd.f32 %v201_v1, %v133_v3 }
 0x100   :  { %v194_v6 = vmul.f32 %v837_v40, %v144_v51  ;;  %v195_v7 = vmul.f32 %v845_v47, %v144_v51  ;;  %v126_v10 = vmul.f32 %v841_v42, %v73_v52  ;;  %v127_v11 = vmul.f32 %v849_v49, %v73_v52 }
 0x101   :  { %v196_v14 = vmul.f32 %v839_v41, %v144_v51  ;;  %v197_v15 = vmul.f32 %v847_v48, %v144_v51  ;;  %v128_v16 = vmul.f32 %v843_v43, %v73_v52  ;;  %v129_v17 = vmul.f32 %v851_v50, %v73_v52 }
 0x102   :  { %v210_v29 = vadd.f32 %v194_v6, %v126_v10  ;;  %v211_v30 = vadd.f32 %v195_v7, %v127_v11 }
 0x103   :  { %v212_v35 = vadd.f32 %v196_v14, %v128_v16  ;;  %v213_v36 = vadd.f32 %v197_v15, %v129_v17 }
 0x104   :  { %v232_v8 = vpop.permute.xlu0 %231  ;;  %v68_v9 = vpop.permute.xlu1 %67 }
 0x105   :  { %v282_v12 = vmul.f32 %v860_v58, %v232_v8  ;;  %v284_v13 = vmul.f32 %v862_v59, %v232_v8  ;;  %v283_v37 = vmul.f32 %v864_v61, %v232_v8  ;;  %v285_v38 = vmul.f32 %v883_v18, %v232_v8 }
 0x106   :  { %v122_v2 = vmul.f32 %v841_v42, %v68_v9  ;;  %v123_v3 = vmul.f32 %v849_v49, %v68_v9 }
 0x107   :  { %v298_v26 = vadd.f32 %v282_v12, %v214_v4  ;;  %v300_v27 = vadd.f32 %v284_v13, %v216_v5  ;;  %v124_v4 = vmul.f32 %v843_v43, %v68_v9  ;;  %v125_v5 = vmul.f32 %v851_v50, %v68_v9 }
 0x108   :  { %v228_v28 = vpop.permute.xlu0 %227  ;;  %v911_v6 = vadd.f32 %v283_v37, %v215_v24  ;;  %v913_v7 = vadd.f32 %v285_v38, %v217_v25 }
 0x109   :  { %v278_v31 = vmul.f32 %v860_v58, %v228_v28  ;;  %v279_v33 = vmul.f32 %v864_v61, %v228_v28  ;;  %v140_v34 = vpop.permute.xlu1 %139  ;;  %v280_v32 = vmul.f32 %v862_v59, %v228_v28  ;;  %v281_v22 = vmul.f32 %v883_v18, %v228_v28 }
 0x10a   :  { %v336_v45 = vsub.f32 %v866_v62, %v298_v26  ;;  %v338_v46 = vsub.f32 %v885_v19, %v300_v27  ;;  %v190_v55 = vmul.f32 %v837_v40, %v140_v34  ;;  %v191_v56 = vmul.f32 %v845_v47, %v140_v34 }
 0x10b   :  { %v294_v39 = vadd.f32 %v278_v31, %v210_v29  ;;  %v295_v44 = vadd.f32 %v279_v33, %v211_v30  ;;  %v296_v51 = vadd.f32 %v280_v32, %v212_v35  ;;  %v297_v52 = vadd.f32 %v281_v22, %v213_v36 }
 0x10c   :  { %v192_v63 = vmul.f32 %v839_v41, %v140_v34  ;;  %v193_v0 = vmul.f32 %v847_v48, %v140_v34  ;;  %v655_v12 = vmul.f32 -100.0, %v336_v45  ;;  %v657_v13 = vmul.f32 -100.0, %v338_v46 }
 0x10d   :  { %v332_v53 = vsub.f32 %v866_v62, %v294_v39  ;;  %v333_v54 = vsub.f32 %v887_v20, %v295_v44  ;;  %v334_v57 = vsub.f32 %v885_v19, %v296_v51  ;;  %v335_v60 = vsub.f32 %v889_v23, %v297_v52  ;;  %v136_v11 = vpop.permute.xlu0 %135 }
 0x10e   :  { %v63_v1 = vpop.permute.xlu1 %62  ;;  %v206_v14 = vadd.f32 %v190_v55, %v122_v2  ;;  %v207_v15 = vadd.f32 %v191_v56, %v123_v3  ;;  %v208_v26 = vadd.f32 %v192_v63, %v124_v4  ;;  %v209_v27 = vadd.f32 %v193_v0, %v125_v5 }
 0x10f   :  { %v651_v8 = vmul.f32 -100.0, %v332_v53  ;;  %v652_v10 = vmul.f32 -100.0, %v333_v54  ;;  %v653_v16 = vmul.f32 -100.0, %v334_v57  ;;  %v654_v17 = vmul.f32 -100.0, %v335_v60 }
 0x110   :  { %v186_v28 = vmul.f32 %v837_v40, %v136_v11  ;;  %v187_v29 = vmul.f32 %v845_v47, %v136_v11  ;;  %v118_v9 = vmul.f32 %v841_v42, %v63_v1  ;;  %v119_v24 = vmul.f32 %v849_v49, %v63_v1 }
 0x111   :  { %v388_v30 = vmul.f32 1.442695, %v651_v8  ;;  %v390_v31 = vmul.f32 1.442695, %v652_v10  ;;  %v189_v35 = vmul.f32 %v847_v48, %v136_v11  ;;  %v121_v36 = vmul.f32 %v851_v50, %v63_v1 }
 0x112   :  { %v188_v47 = vmul.f32 %v839_v41, %v136_v11  ;;  %v120_v42 = vmul.f32 %v843_v43, %v63_v1  ;;  %v202_v39 = vadd.f32 %v186_v28, %v118_v9  ;;  %v203_v44 = vadd.f32 %v187_v29, %v119_v24 }
 0x113   :  { %v224_v25 = vpop.permute.xlu1 %223  ;;  %v205_v41 = vadd.f32 %v189_v35, %v121_v36  ;;  %v392_v60 = vmul.f32 1.442695, %v653_v16  ;;  %v394_v63 = vmul.f32 1.442695, %v654_v17  ;;  %v396_v4 = vmul.f32 1.442695, %v655_v12 }
 0x114   :  { %v274_v33 = vmul.f32 %v860_v58, %v224_v25  ;;  %v275_v34 = vmul.f32 %v864_v61, %v224_v25  ;;  %v276_v32 = vmul.f32 %v862_v59, %v224_v25  ;;  %v277_v40 = vmul.f32 %v883_v18, %v224_v25 }
 0x115   :  { %v204_v55 = vadd.f32 %v188_v47, %v120_v42  ;;  %677 = vpow2.f32 %v388_v30  ;;  %v400_v5 = vmul.f32 1.442695, %v657_v13  ;;  %v337_v10 = vsub.f32 %v887_v20, %v911_v6 }
 0x116   :  { %v290_v49 = vadd.f32 %v274_v33, %v206_v14  ;;  %v291_v22 = vadd.f32 %v275_v34, %v207_v15  ;;  %v292_v37 = vadd.f32 %v276_v32, %v208_v26  ;;  %v293_v38 = vadd.f32 %v277_v40, %v209_v27 }
 0x117   :  { %v220_v45 = vpop.permute.xlu1 %219  ;;  %679 = vpow2.f32 %v390_v31  ;;  %v339_v15 = vsub.f32 %v889_v23, %v913_v7  ;;  %v656_v27 = vmul.f32 -100.0, %v337_v10 }
 0x118   :  { %v328_v46 = vsub.f32 %v866_v62, %v290_v49  ;;  %v329_v48 = vsub.f32 %v887_v20, %v291_v22  ;;  %v270_v50 = vmul.f32 %v860_v58, %v220_v45  ;;  %v271_v51 = vmul.f32 %v864_v61, %v220_v45 }
 0x119   :  { %v330_v52 = vsub.f32 %v885_v19, %v292_v37  ;;  %v272_v43 = vmul.f32 %v862_v59, %v220_v45  ;;  %v273_v53 = vmul.f32 %v883_v18, %v220_v45  ;;  %v331_v54 = vsub.f32 %v889_v23, %v293_v38 }
 0x11a   :  { %v286_v56 = vadd.f32 %v270_v50, %v202_v39  ;;  %v287_v57 = vadd.f32 %v271_v51, %v203_v44  ;;  %v647_v0 = vmul.f32 -100.0, %v328_v46  ;;  %v648_v2 = vmul.f32 -100.0, %v329_v48 }
 0x11b   :  { %v289_v1 = vadd.f32 %v273_v53, %v205_v41  ;;  %v288_v58 = vadd.f32 %v272_v43, %v204_v55  ;;  %v649_v59 = vmul.f32 -100.0, %v330_v52  ;;  %v650_v8 = vmul.f32 -100.0, %v331_v54 }
 0x11c   :  { %v324_v61 = vsub.f32 %v866_v62, %v286_v56  ;;  %v325_v3 = vsub.f32 %v887_v20, %v287_v57  ;;  %681 = vpow2.f32 %v392_v60  ;;  %v380_v11 = vmul.f32 1.442695, %v647_v0 }
 0x11d   :  { %v327_v18 = vsub.f32 %v889_v23, %v289_v1  ;;  %683 = vpow2.f32 %v394_v63  ;;  %v382_v62 = vmul.f32 1.442695, %v648_v2  ;;  %v326_v12 = vsub.f32 %v885_v19, %v288_v58 }
 0x11e   :  { %v643_v14 = vmul.f32 -100.0, %v324_v61  ;;  %v644_v16 = vmul.f32 -100.0, %v325_v3  ;;  %685 = vpow2.f32 %v396_v4  ;;  %v384_v17 = vmul.f32 1.442695, %v649_v59 }
 0x11f   :  { %v646_v26 = vmul.f32 -100.0, %v327_v18  ;;  %687 = vpow2.f32 %v400_v5  ;;  %v386_v13 = vmul.f32 1.442695, %v650_v8  ;;  %v658_v20 = vmul.f32 -100.0, %v339_v15 }
 0x120   :  { %689 = vpow2.f32 %v380_v11  ;;  %v372_v28 = vmul.f32 1.442695, %v643_v14  ;;  %v645_v6 = vmul.f32 -100.0, %v326_v12  ;;  %v374_v29 = vmul.f32 1.442695, %v644_v16 }
 0x121   :  { %691 = vpow2.f32 %v382_v62  ;;  %v378_v9 = vmul.f32 1.442695, %v646_v26  ;;  %v398_v23 = vmul.f32 1.442695, %v656_v27  ;;  %v402_v7 = vmul.f32 1.442695, %v658_v20 }
 0x122   :  { %693 = vpow2.f32 %v384_v17  ;;  %v376_v19 = vmul.f32 1.442695, %v645_v6  ;;  %v678_v24 = vpop.eup %677  ;;  %v453_v62 = vld [vmem:[%s953_s3] sm:$0x3]  ;;  %v767_v12 = vmov 1983009808  }
 0x123   :  { %695 = vpow2.f32 %v386_v13  ;;  %v412_v33 = vadd.f32 1.0, %v678_v24  ;;  %v607_v16 = vunpack.c.l.s4 %v767_v12  ;;  %s768_s3 = smov [#allocation3]  }
 0x124   :  { %697 = vpow2.f32 %v372_v28  ;;  %v680_v25 = vpop.eup %679  ;;  %s635_s13 = sshll.u32 %s768_s3, 4  ;;  %s636_s13 = int_to_ptr.vmem [resolvable:$true] %s635_s13 }
 0x125   :  { %699 = vpow2.f32 %v374_v29  ;;  %v413_v35 = vadd.f32 1.0, %v680_v25  ;;  %v608_v17 = vunpack.c.0.s8 %v607_v16  ;;  %s741_s14 = scalar_lea.vmem %s636_s13, 128  ;;  %p746_p1 = scmp.lt.s32.totalorder %s636_s13, %s636_s13 }
 0x126   :  { %701 = vpow2.f32 %v378_v9  ;;  %p742_p0 = scmp.ne.s32.totalorder %s636_s13, %s741_s14  ;;  %p747_p2 = scmp.lt.s32.totalorder %s741_s14, %s741_s14 }
 0x127   :  { %703 = vpow2.f32 %v398_v23  ;;  %v611_v27 = vsub.s32 %v608_v17, %v823_v21 }
 0x128   :  { %705 = vpow2.f32 %v402_v7  ;;  %p748_p3 = por %p747_p2, %p746_p1 }
 0x129   :  { %v682_v30 = vpop.eup %681  ;;  %707 = vpow2.f32 %v376_v19 }
 0x12a   :  { %v684_v31 = vpop.eup %683  ;;  %v414_v32 = vadd.f32 1.0, %v682_v30  ;;  %709 = vrcp.f32 %v412_v33  ;;  %p749_p4 = pnand %p748_p3, %p742_p0 }
 0x12b   :  { %v686_v34 = vpop.eup %685  ;;  %v415_v47 = vadd.f32 1.0, %v684_v31  ;;  %711 = vrcp.f32 %v413_v35 }
 0x12c   :  { %v688_v36 = vpop.eup %687  ;;  %v416_v49 = vadd.f32 1.0, %v686_v34  ;;  %713 = vrcp.f32 %v414_v32 }
 0x12d   :  { %v690_v40 = vpop.eup %689  ;;  %v418_v37 = vadd.f32 1.0, %v688_v36  ;;  %715 = vrcp.f32 %v415_v47 }
 0x12e   :  { %v692_v42 = vpop.eup %691  ;;  %v408_v39 = vadd.f32 1.0, %v690_v40  ;;  %717 = vrcp.f32 %v416_v49 }
 0x12f   :  { %v694_v22 = vpop.eup %693  ;;  %v409_v45 = vadd.f32 1.0, %v692_v42  ;;  %719 = vrcp.f32 %v418_v37 }
 0x130   :  { %v696_v38 = vpop.eup %695  ;;  %v410_v48 = vadd.f32 1.0, %v694_v22  ;;  %721 = vrcp.f32 %v408_v39 }
 0x131   :  { %v698_v44 = vpop.eup %697  ;;  %v411_v41 = vadd.f32 1.0, %v696_v38  ;;  %723 = vrcp.f32 %v409_v45 }
 0x132   :  { %v700_v46 = vpop.eup %699  ;;  %725 = vrcp.f32 %v410_v48  ;;  %v404_v54 = vadd.f32 1.0, %v698_v44 }
 0x133   :  { %v702_v50 = vpop.eup %701  ;;  %v405_v56 = vadd.f32 1.0, %v700_v46 }
 0x134   :  { %v704_v51 = vpop.eup %703  ;;  %v407_v57 = vadd.f32 1.0, %v702_v50 }
 0x135   :  { %v706_v52 = vpop.eup %705  ;;  %v417_v43 = vadd.f32 1.0, %v704_v51 }
 0x136   :  { %v708_v53 = vpop.eup %707  ;;  %v419_v55 = vadd.f32 1.0, %v706_v52 }
 0x137   :  { %727 = vrcp.f32 %v417_v43  ;;  %v406_v60 = vadd.f32 1.0, %v708_v53  ;;  %v710_v63 = vpop.eup %709 }
 0x138   :  { %729 = vrcp.f32 %v419_v55  ;;  %v712_v0 = vpop.eup %711 }
 0x139   :  { %731 = vrcp.f32 %v411_v41  ;;  %v714_v1 = vpop.eup %713 }
 0x13a   :  { %733 = vrcp.f32 %v404_v54  ;;  %v716_v2 = vpop.eup %715 }
 0x13b   :  { %735 = vrcp.f32 %v405_v56  ;;  %v718_v58 = vpop.eup %717 }
 0x13c   :  { %737 = vrcp.f32 %v407_v57  ;;  %v720_v61 = vpop.eup %719 }
 0x13d   :  { %739 = vrcp.f32 %v406_v60  ;;  %v722_v3 = vpop.eup %721 }
 0x13e   :  { %v724_v4 = vpop.eup %723 }
 0x13f   :  { %v726_v59 = vpop.eup %725 }
 0x144   :  { %v728_v18 = vpop.eup %727 }
 0x145   :  { %v730_v5 = vpop.eup %729  ;;  %482 = vmatprep.subr.mxu0 %v728_v18 }
 0x146   :  { %v732_v8 = vpop.eup %731  ;;  %553 = vmatprep.subr.mxu1 %v730_v5  ;;  %483 = vmatpush1.msra.mxu0 %v718_v58 }
 0x147   :  { %v734_v10 = vpop.eup %733  ;;  %554 = vmatpush1.msra.mxu1 %v720_v61  ;;  %484 = vmatprep.subr.mxu0 %v712_v0 }
 0x148   :  { %v736_v11 = vpop.eup %735  ;;  %555 = vmatprep.subr.mxu1 %v716_v2  ;;  %485 = vmatpush1.msra.mxu0 %v710_v63 }
 0x149   :  { %v738_v14 = vpop.eup %737  ;;  %556 = vmatpush1.msra.mxu1 %v714_v1  ;;  %486 = vmatprep.subr.mxu0 %v724_v4 }
 0x14a   :  { %v740_v15 = vpop.eup %739  ;;  %557 = vmatprep.subr.mxu1 %v732_v8  ;;  %487 = vmatpush1.msra.mxu0 %v722_v3 }
 0x14b   :  { %558 = vmatpush1.msra.mxu1 %v726_v59  ;;  %488 = vmatprep.subr.mxu0 %v736_v11 }
 0x14c   :  { %559 = vmatprep.subr.mxu1 %v738_v14  ;;  %489 = vmatpush1.msra.mxu0 %v734_v10 }
 0x14d   :  { %560 = vmatpush1.msra.mxu1 %v740_v15  ;;  %659 = vmatmul.mubr.msk.f32.vlgmr.msra.gmra.mxu0 %vm454_vm0, %v453_v62 }
 0x14e   :  { %660 = vmatmul.mubr.msk.f32.vlgmr.msra.gmra.mxu1 %vm454_vm0, %v453_v62 }
 0x20d   :  { %v524_v26 = vpop.f32.mrf.mxu0 }
 0x20e   :  { %v595_v13 = vpop.f32.mrf.mxu1 }
 0x20f   :  { %v526_v28 = vpop.f32.mrf.mxu0 }
 0x210   :  { %v604_v20 = vcombine.low %v524_v26, %v526_v28  ;;  %v597_v6 = vpop.f32.mrf.mxu1 }
 0x211   :  { %v605_v29 = vcombine.low %v595_v13, %v597_v6 }
 0x212   :  { %v612_v9 = vrot.slane %v604_v20, %v611_v27 }
 0x213   :  { %v619_v23 = vrot.slane %v605_v29, %v611_v27 }
 0x215   :  { %v620_v7 = vcombine.low %v612_v9, %v619_v23 }
 0x217   :  { %628 = vst [vmem:[#allocation3] sm:$0xff] %v620_v7 }
 0x218   :  { %752 = shalt.err (!%p749_p4)
}
 0x219   :  { %638 = dma.vmem_to_hbm [thread:$0]  %s636_s13, 128, %s955_s5, [#allocation4]  }
 0x21a   :  { %761 = dma.done.wait [#allocation4], 128  }
 0x21b   :  { %762 = vsyncadd [#allocation4], 4294967168 }
 0x21c   :  { %642 = vsyncpa [#allocation4], 1 }

</bundles_post_ra>
